<compile_context>
chip_gen: v7x
topology: tpu7x:2x2x1
jax: 0.10.0
libtpu: 0.0.40
codegen_flags: <defaults>
</compile_context>

<pallas_src>
import functools

import numpy as np
import jax
import jax.numpy as jnp
from jax import lax
from jax.experimental import pallas as pl
from jax.experimental.pallas import tpu as pltpu


def _cdiv(a, b):
    return (a + b - 1) // b


def _round_up(a, b):
    return _cdiv(a, b) * b


# ---------------------------------------------------------------------------
# Deterministic parameter construction (librosa.filters.mel / hann window,
# re-implemented in numpy so no external data is needed).
# ---------------------------------------------------------------------------
def _hz_to_mel(freq):
    # Slaney mel scale (librosa default, htk=False)
    freq = np.asarray(freq, dtype=np.float64)
    f_min, f_sp = 0.0, 200.0 / 3.0
    mels = (freq - f_min) / f_sp
    min_log_hz = 1000.0
    min_log_mel = (min_log_hz - f_min) / f_sp
    logstep = np.log(6.4) / 27.0
    log_region = freq >= min_log_hz
    mels = np.where(
        log_region,
        min_log_mel + np.log(np.maximum(freq, 1e-10) / min_log_hz) / logstep,
        mels,
    )
    return mels


def _mel_to_hz(mels):
    mels = np.asarray(mels, dtype=np.float64)
    f_min, f_sp = 0.0, 200.0 / 3.0
    freqs = f_min + f_sp * mels
    min_log_hz = 1000.0
    min_log_mel = (min_log_hz - f_min) / f_sp
    logstep = np.log(6.4) / 27.0
    log_region = mels >= min_log_mel
    freqs = np.where(
        log_region, min_log_hz * np.exp(logstep * (mels - min_log_mel)), freqs
    )
    return freqs


def mel_filterbank(sr, n_fft, n_mels, fmin, fmax):
    """librosa.filters.mel(htk=False, norm='slaney') equivalent. -> [n_mels, n_fft//2+1]"""
    if fmax is None:
        fmax = sr / 2.0
    n_freqs = n_fft // 2 + 1
    fftfreqs = np.linspace(0.0, sr / 2.0, n_freqs)
    mel_min, mel_max = _hz_to_mel(fmin), _hz_to_mel(fmax)
    mel_pts = np.linspace(mel_min, mel_max, n_mels + 2)
    mel_f = _mel_to_hz(mel_pts)
    fdiff = np.diff(mel_f)
    ramps = mel_f[:, None] - fftfreqs[None, :]
    weights = np.zeros((n_mels, n_freqs), dtype=np.float64)
    for i in range(n_mels):
        lower = -ramps[i] / fdiff[i]
        upper = ramps[i + 2] / fdiff[i + 1]
        weights[i] = np.maximum(0.0, np.minimum(lower, upper))
    # slaney normalization
    enorm = 2.0 / (mel_f[2 : n_mels + 2] - mel_f[:n_mels])
    weights *= enorm[:, None]
    return weights.astype(np.float32)


def hann_window(win_length):
    # torch.hann_window(periodic=True)
    n = np.arange(win_length, dtype=np.float64)
    return (0.5 - 0.5 * np.cos(2.0 * np.pi * n / win_length)).astype(np.float32)


# ---------------------------------------------------------------------------
# Pallas kernel: hop-decomposed windowed real-DFT + magnitude + mel + log.
# Works on (tile, hop) chunk blocks of the padded audio (no frames tensor),
# writes a lane-dense (M, tile) output block.
# ---------------------------------------------------------------------------
def _melspec_kernel(chunk_ref, halo_ref, cossin_ref, mel_ref, out_ref, *,
                    f_pad, hop, r_fac):
    """One (batch, frame-row-tile) grid step.

    chunk_ref : (tile, hop)       chunk rows t .. t+tile-1 of the padded audio
    halo_ref  : (8, hop)          chunk rows t+tile .. t+tile+7 (next tile's first rows)
    cossin_ref: (n_fft, 2*f_pad)  fused window*[cos | -sin] real-DFT weight
    mel_ref   : (M, f_pad)        mel filterbank (freq axis zero-padded to f_pad)
    out_ref   : (M, tile)         log-mel output block (lane axis = frames)
    """
    w = cossin_ref[...]
    cm = chunk_ref[...]
    # Frame t = [chunk t | chunk t+1 | ... | chunk t+r_fac-1], so the DFT matmul
    # decomposes into r_fac (tile, hop) x (hop, 2*f_pad) MXU matmuls:
    #   y[t] = sum_j chunks[t + j] @ W[j*hop : (j+1)*hop]
    y = jnp.dot(cm, w[0:hop, :], preferred_element_type=jnp.float32)
    if r_fac > 1:
        halo = halo_ref[...]
        for j in range(1, r_fac):
            shifted = jnp.concatenate([cm[j:, :], halo[:j, :]], axis=0)
            y = y + jnp.dot(shifted, w[j * hop:(j + 1) * hop, :],
                            preferred_element_type=jnp.float32)
    re = y[:, :f_pad]                                      # lane-aligned slices
    im = y[:, f_pad:]
    mag = jnp.sqrt(re * re + im * im + 1e-9)               # (tile, f_pad)
    # mel_fb (M, f_pad) contracted with mag (tile, f_pad) over freq -> (M, tile),
    # i.e. the output is produced already transposed and stored lane-dense.
    mel = lax.dot_general(mel_ref[...], mag, (((1,), (1,)), ((), ())),
                          preferred_element_type=jnp.float32)
    out_ref[...] = jnp.log(jnp.maximum(mel, 1e-5))


class MelSpectrogramPallas:
    def __init__(self, sample_rate, frame_shift, frame_length, fft_length,
                 num_mel_bins, freq_range, row_tile=512, dft_dtype=jnp.float32):
        assert row_tile % 128 == 0
        assert frame_length <= fft_length
        self.frame_shift = frame_shift
        self.frame_length = frame_length
        self.fft_length = fft_length
        self.num_mel_bins = num_mel_bins
        self.row_tile = row_tile
        self.dft_dtype = dft_dtype
        fmin, fmax = freq_range if freq_range is not None else (0.0, None)

        n_fft = fft_length
        hop = frame_shift
        n_freqs = n_fft // 2 + 1
        f_pad = _round_up(n_freqs, 128)          # pad freq bins to lane multiple
        self.f_pad = f_pad

        # Fast (gather-free) path: each frame is a whole number of hop-sized chunk
        # rows and the 8-row halo covers the (r_fac - 1) rows borrowed from the
        # next tile.
        self.r_fac = n_fft // hop if n_fft % hop == 0 else 0
        self._fast_path = (n_fft % hop == 0) and (1 <= self.r_fac <= 9)

        # Hann window, zero-padded (centered) to n_fft like torch.stft does.
        win = hann_window(frame_length)
        left = (n_fft - frame_length) // 2
        win_full = np.zeros(n_fft, dtype=np.float32)
        win_full[left:left + frame_length] = win

        # Real-DFT matrices with the window folded in; zero-padded to f_pad columns
        # and concatenated into a single fused weight [n_fft, 2*f_pad].
        n = np.arange(n_fft, dtype=np.float64)[:, None]
        k = np.arange(n_freqs, dtype=np.float64)[None, :]
        angle = 2.0 * np.pi * n * k / n_fft
        cos_w = np.zeros((n_fft, f_pad), dtype=np.float32)
        sin_w = np.zeros((n_fft, f_pad), dtype=np.float32)
        cos_w[:, :n_freqs] = (np.cos(angle) * win_full[:, None]).astype(np.float32)
        sin_w[:, :n_freqs] = (-np.sin(angle) * win_full[:, None]).astype(np.float32)
        cossin = np.concatenate([cos_w, sin_w], axis=1)       # (NFFT, 2*f_pad)
        self.cossin_w = jnp.asarray(cossin, dtype=dft_dtype)
        # Unpadded pieces kept for the pure-JAX reference / slow fallback.
        self.cos_w = jnp.asarray(cos_w[:, :n_freqs])
        self.sin_w = jnp.asarray(sin_w[:, :n_freqs])

        # Mel filter: (M, F) zero-padded to (M, f_pad) so padded DFT bins contribute 0.
        mel_fb = mel_filterbank(sample_rate, n_fft, num_mel_bins, fmin, fmax)
        mel_pad = np.zeros((num_mel_bins, f_pad), dtype=np.float32)
        mel_pad[:, :n_freqs] = mel_fb
        self.mel_mf = jnp.asarray(mel_pad)               # (M, f_pad)  kernel layout
        self.mel_fm = jnp.asarray(mel_fb.T)              # (F, M)      reference layout

        # Jit the whole forward so pad + reshape + pallas_call + slice fuse into
        # one XLA program.
        self._forward = jax.jit(self._forward_impl)

    # ------------------------------------------------------------------ helpers
    def _pick_tile(self, T, B):
        tile = max(128, min(self.row_tile, _round_up(T, 128)))
        # v7x megacore: with batch == 1 keep >= 2 steps on the (parallel) frame axis.
        if B == 1:
            while tile > 128 and _cdiv(T, tile) < 2:
                tile -= 128
        return tile

    # ------------------------------------------------------------------ forward
    def _forward_impl(self, audio):
        """audio: [B, num_samples] -> [B, num_mel_bins, num_frames]"""
        B, num_samples = audio.shape
        n_fft, hop = self.fft_length, self.frame_shift
        pad = (n_fft - hop) // 2
        padded = jnp.pad(audio, ((0, 0), (pad, pad)), mode="reflect")
        L = num_samples + 2 * pad
        T = 1 + (L - n_fft) // hop
        if not self._fast_path:
            return self._forward_slow(padded, T)

        r_fac = self.r_fac
        F_pad, M = self.f_pad, self.num_mel_bins
        tile = self._pick_tile(T, B)
        T_pad = _round_up(T, tile)

        # Single zero-pad straight to the final framed length (no second
        # full-tensor pad over a materialized frames tensor), then a *free*
        # reshape into hop-sized chunk rows: chunks[:, t] == padded[:, t*hop:(t+1)*hop].
        halo_rows = 8
        n_rows = T_pad + _round_up(max(halo_rows, r_fac), 8)
        padded = jnp.pad(padded, ((0, 0), (0, n_rows * hop - L)))
        chunks = padded.reshape(B, n_rows, hop)
        if self.dft_dtype != jnp.float32:
            chunks = chunks.astype(self.dft_dtype)

        kernel = functools.partial(_melspec_kernel, f_pad=F_pad, hop=hop, r_fac=r_fac)

        # Explicit VMEM budget (review: re-derive for v7x's 64 MiB physical VMEM).
        item = jnp.dtype(self.dft_dtype).itemsize
        per_step = (2 * tile * hop * item            # chunk block, double-buffered
                    + 2 * halo_rows * hop * item     # halo block
                    + 2 * n_fft * 2 * F_pad * item   # fused DFT weight
                    + 2 * M * F_pad * 4              # mel weight
                    + 2 * M * tile * 4               # output block
                    + 4 * tile * F_pad * 4)          # y / mag live intermediates
        vmem_limit = int(min(max(32 * 2 ** 20, 2 * per_step), 56 * 2 ** 20))

        out = pl.pallas_call(
            kernel,
            out_shape=jax.ShapeDtypeStruct((B, M, T_pad), jnp.float32),
            grid_spec=pltpu.PrefetchScalarGridSpec(
                num_scalar_prefetch=0,
                grid=(B, T_pad // tile),
                in_specs=[
                    # tile consecutive chunk rows of this batch element
                    pl.BlockSpec((None, tile, hop), lambda b, r: (b, r, 0)),
                    # 8-row halo: the first chunk rows of the *next* tile
                    pl.BlockSpec((None, halo_rows, hop),
                                 lambda b, r: (b, (r + 1) * (tile // halo_rows), 0)),
                    # Grid-invariant weights: constant index_map => DMA'd only once.
                    # TODO(synk): on v7x at production n_fft, single-buffer these
                    # (pipeline_mode=pl.Buffered(1)) to halve their VMEM footprint.
                    pl.BlockSpec((n_fft, 2 * F_pad), lambda b, r: (0, 0)),
                    pl.BlockSpec((M, F_pad), lambda b, r: (0, 0)),
                ],
                out_specs=pl.BlockSpec((None, M, tile), lambda b, r: (b, 0, r)),
            ),
            compiler_params=pltpu.CompilerParams(
                dimension_semantics=("parallel", "parallel"),
                vmem_limit_bytes=vmem_limit),
        )(chunks, chunks, self.cossin_w, self.mel_mf)

        # Output is already (B, M, T_pad); drop the padded frame columns.
        return out[:, :, :T]

    def _forward_slow(self, padded, T):
        # TODO(synk): configs where frame_shift does not divide fft_length fall back
        # to this pure-JAX path (the Pallas fast path needs hop-aligned chunk rows).
        idx = (np.arange(T)[:, None] * self.frame_shift
               + np.arange(self.fft_length)[None, :])
        frames = padded[:, idx]
        re = jnp.einsum("btn,nf->btf", frames, self.cos_w)
        im = jnp.einsum("btn,nf->btf", frames, self.sin_w)
        mag = jnp.sqrt(re * re + im * im + 1e-9)
        mel = jnp.einsum("btf,fm->btm", mag, self.mel_fm)
        return jnp.transpose(jnp.log(jnp.maximum(mel, 1e-5)), (0, 2, 1))

    def __call__(self, audio):
        return self._forward(audio)


# Pure-JAX reference (frame-gather formulation) for a sanity check.
def _reference(model, audio):
    B, num_samples = audio.shape
    n_fft, hop = model.fft_length, model.frame_shift
    pad = (n_fft - hop) // 2
    padded = jnp.pad(audio, ((0, 0), (pad, pad)), mode="reflect")
    L = num_samples + 2 * pad
    T = 1 + (L - n_fft) // hop
    idx = np.arange(T)[:, None] * hop + np.arange(n_fft)[None, :]
    frames = padded[:, idx]
    re = jnp.einsum("btn,nf->btf", frames, model.cos_w)
    im = jnp.einsum("btn,nf->btf", frames, model.sin_w)
    mag = jnp.sqrt(re * re + im * im + 1e-9)
    mel = jnp.einsum("btf,fm->btm", mag, model.mel_fm)
    return jnp.transpose(jnp.log(jnp.maximum(mel, 1e-5)), (0, 2, 1))


if __name__ == "__main__":
    # Small, consistent configuration (matches the PyTorch module's semantics).
    sample_rate = 16000
    frame_shift = 64        # hop
    frame_length = 128      # window length
    fft_length = 128        # n_fft
    num_mel_bins = 16
    freq_range = (0.0, 8000.0)

    key = jax.random.PRNGKey(0)
    k1, k2 = jax.random.split(key)

    # Case 1: tiny input -> single 128-frame row tile per batch element.
    model = MelSpectrogramPallas(sample_rate, frame_shift, frame_length,
                                 fft_length, num_mel_bins, freq_range)
    batch, num_samples = 2, 512
    audio = jax.random.normal(k1, (batch, num_samples), dtype=jnp.float32)
    spec = jax.block_until_ready(model(audio))
    ref = jax.block_until_ready(_reference(model, audio))
    T_expected = 1 + (num_samples + 2 * ((fft_length - frame_shift) // 2)
                      - fft_length) // frame_shift
    assert spec.shape == ref.shape == (batch, num_mel_bins, T_expected)
    np.testing.assert_allclose(np.asarray(spec), np.asarray(ref), rtol=1e-4, atol=1e-4)

    # Case 2: enough frames for two row tiles -> exercises the cross-tile halo path.
    model2 = MelSpectrogramPallas(sample_rate, frame_shift, frame_length,
                                  fft_length, num_mel_bins, freq_range, row_tile=128)
    num_samples2 = 8256      # -> 129 frames, i.e. more than one 128-frame tile
    audio2 = jax.random.normal(k2, (batch, num_samples2), dtype=jnp.float32)
    spec2 = jax.block_until_ready(model2(audio2))
    ref2 = jax.block_until_ready(_reference(model2, audio2))
    assert spec2.shape == ref2.shape
    np.testing.assert_allclose(np.asarray(spec2), np.asarray(ref2), rtol=1e-4, atol=1e-4)

    print("KERNEL_OK")
</pallas_src>

<mosaic_0001>
module attributes {stable_mosaic.version = 11 : i64} {
  func.func @_melspec_kernel(%arg0: i32, %arg1: i32, %arg2: memref<1x128x64xf32, #tpu.memory_space<vmem>>, %arg3: memref<1x8x64xf32, #tpu.memory_space<vmem>>, %arg4: memref<128x256xf32, #tpu.memory_space<vmem>>, %arg5: memref<16x128xf32, #tpu.memory_space<vmem>>, %arg6: memref<1x16x128xf32, #tpu.memory_space<vmem>>) attributes {dimension_semantics = [#tpu.dimension_semantics<parallel>, #tpu.dimension_semantics<parallel>], iteration_bounds = array<i64: 2, 1>, scalar_prefetch = 0 : i64, scratch_operands = 0 : i64, tpu.core_type = #tpu.core_type<tc>, window_params = [{transform_indices = @transform_0, window_bounds = array<i64: 1, 128, 64>}, {transform_indices = @transform_1, window_bounds = array<i64: 1, 8, 64>}, {pipeline_mode = #tpu.pipeline_mode<synchronous>, transform_indices = @transform_2, window_bounds = array<i64: 128, 256>}, {pipeline_mode = #tpu.pipeline_mode<synchronous>, transform_indices = @transform_3, window_bounds = array<i64: 16, 128>}, {transform_indices = @transform_4, window_bounds = array<i64: 1, 16, 128>}]} {
    %c0 = arith.constant 0 : index
    %c0_0 = arith.constant 0 : index
    %0 = vector.load %arg4[%c0, %c0_0] : memref<128x256xf32, #tpu.memory_space<vmem>>, vector<128x256xf32>
    %c0_1 = arith.constant 0 : index
    %c0_2 = arith.constant 0 : index
    %c0_3 = arith.constant 0 : index
    %1 = vector.load %arg2[%c0_1, %c0_2, %c0_3] : memref<1x128x64xf32, #tpu.memory_space<vmem>>, vector<1x128x64xf32>
    %2 = vector.shape_cast %1 : vector<1x128x64xf32> to vector<128x64xf32>
    %3 = vector.extract_strided_slice %0 {offsets = [0, 0], sizes = [64, 256], strides = [1, 1]} : vector<128x256xf32> to vector<64x256xf32>
    %cst = arith.constant dense<0.000000e+00> : vector<128x256xf32>
    %4 = tpu.matmul %2, %3, %cst {dimension_numbers = #tpu.dot_dimension_numbers<[1], [0], [0], [1], [0, 0, 1, 1], [], []>} : vector<128x64xf32>, vector<64x256xf32>, vector<128x256xf32> -> vector<128x256xf32>
    %c0_4 = arith.constant 0 : index
    %c0_5 = arith.constant 0 : index
    %c0_6 = arith.constant 0 : index
    %5 = vector.load %arg3[%c0_4, %c0_5, %c0_6] : memref<1x8x64xf32, #tpu.memory_space<vmem>>, vector<1x8x64xf32>
    %6 = vector.shape_cast %5 : vector<1x8x64xf32> to vector<8x64xf32>
    %7 = vector.extract_strided_slice %2 {offsets = [1, 0], sizes = [127, 64], strides = [1, 1]} : vector<128x64xf32> to vector<127x64xf32>
    %8 = vector.extract_strided_slice %6 {offsets = [0, 0], sizes = [1, 64], strides = [1, 1]} : vector<8x64xf32> to vector<1x64xf32>
    %9 = tpu.concatenate %7, %8 in 0 : vector<127x64xf32>, vector<1x64xf32> -> vector<128x64xf32>
    %10 = vector.extract_strided_slice %0 {offsets = [64, 0], sizes = [64, 256], strides = [1, 1]} : vector<128x256xf32> to vector<64x256xf32>
    %cst_7 = arith.constant dense<0.000000e+00> : vector<128x256xf32>
    %11 = tpu.matmul %9, %10, %cst_7 {dimension_numbers = #tpu.dot_dimension_numbers<[1], [0], [0], [1], [0, 0, 1, 1], [], []>} : vector<128x64xf32>, vector<64x256xf32>, vector<128x256xf32> -> vector<128x256xf32>
    %12 = arith.addf %4, %11 : vector<128x256xf32>
    %13 = vector.extract_strided_slice %12 {offsets = [0, 0], sizes = [128, 128], strides = [1, 1]} : vector<128x256xf32> to vector<128x128xf32>
    %14 = vector.extract_strided_slice %12 {offsets = [0, 128], sizes = [128, 128], strides = [1, 1]} : vector<128x256xf32> to vector<128x128xf32>
    %15 = arith.mulf %13, %13 : vector<128x128xf32>
    %16 = arith.mulf %14, %14 : vector<128x128xf32>
    %17 = arith.addf %15, %16 : vector<128x128xf32>
    %cst_8 = arith.constant 9.99999971E-10 : f32
    %18 = vector.broadcast %cst_8 : f32 to vector<128x128xf32>
    %19 = arith.addf %17, %18 : vector<128x128xf32>
    %20 = math.sqrt %19 : vector<128x128xf32>
    %c0_9 = arith.constant 0 : index
    %c0_10 = arith.constant 0 : index
    %21 = vector.load %arg5[%c0_9, %c0_10] : memref<16x128xf32, #tpu.memory_space<vmem>>, vector<16x128xf32>
    %cst_11 = arith.constant dense<0.000000e+00> : vector<16x128xf32>
    %22 = tpu.matmul %21, %20, %cst_11 {dimension_numbers = #tpu.dot_dimension_numbers<[1], [1], [0], [0], [0, 0, 1, 0], [], []>} : vector<16x128xf32>, vector<128x128xf32>, vector<16x128xf32> -> vector<16x128xf32>
    %cst_12 = arith.constant 9.99999974E-6 : f32
    %23 = vector.broadcast %cst_12 : f32 to vector<16x128xf32>
    %24 = arith.maximumf %22, %23 : vector<16x128xf32>
    %25 = math.log %24 : vector<16x128xf32>
    %c0_13 = arith.constant 0 : index
    %c0_14 = arith.constant 0 : index
    %c0_15 = arith.constant 0 : index
    %26 = vector.load %arg6[%c0_13, %c0_14, %c0_15] : memref<1x16x128xf32, #tpu.memory_space<vmem>>, vector<1x16x128xf32>
    %27 = vector.shape_cast %26 : vector<1x16x128xf32> to vector<16x128xf32>
    %28 = vector.shape_cast %25 : vector<16x128xf32> to vector<1x16x128xf32>
    tpu.vector_store %arg6[%c0_13, %c0_14, %c0_15], %28 {strides = array<i32>} : memref<1x16x128xf32, #tpu.memory_space<vmem>>, vector<1x16x128xf32>,
    return
  }
  func.func @transform_0(%arg0: i32, %arg1: i32) -> (i32, i32, i32) {
    %c0_i32 = arith.constant 0 : i32
    %c0_i32_0 = arith.constant 0 : i32
    return %arg0, %arg1, %c0_i32 : i32, i32, i32
  }
  func.func @transform_1(%arg0: i32, %arg1: i32) -> (i32, i32, i32) {
    %c1_i32 = arith.constant 1 : i32
    %0 = arith.addi %arg1, %c1_i32 : i32
    %c16_i32 = arith.constant 16 : i32
    %1 = arith.muli %0, %c16_i32 : i32
    %c0_i32 = arith.constant 0 : i32
    %c0_i32_0 = arith.constant 0 : i32
    return %arg0, %1, %c0_i32 : i32, i32, i32
  }
  func.func @transform_2(%arg0: i32, %arg1: i32) -> (i32, i32) {
    %c0_i32 = arith.constant 0 : i32
    %c0_i32_0 = arith.constant 0 : i32
    %c0_i32_1 = arith.constant 0 : i32
    return %c0_i32, %c0_i32_0 : i32, i32
  }
  func.func @transform_3(%arg0: i32, %arg1: i32) -> (i32, i32) {
    %c0_i32 = arith.constant 0 : i32
    %c0_i32_0 = arith.constant 0 : i32
    %c0_i32_1 = arith.constant 0 : i32
    return %c0_i32, %c0_i32_0 : i32, i32
  }
  func.func @transform_4(%arg0: i32, %arg1: i32) -> (i32, i32, i32) {
    %c0_i32 = arith.constant 0 : i32
    %c0_i32_0 = arith.constant 0 : i32
    return %arg0, %c0_i32, %arg1 : i32, i32, i32
  }
}

</mosaic_0001>

<bundles_post_ra>
// kernel: _forward_impl.1
= control target key start
LH: loop header
LB: loop body
LE: loop exit
PB: predicated region body
PF: predicated region fallthrough
CT: control target
= control target key end

     0   :  { %s1460_s15 = smov 0   ;;  %s1462_s16 = smov 0   ;;  %s1808_s0 = inlined_call_operand.vmem [shape: f32[2,136,64], index: 0, kind: input, shape index: {}, may-alias: {0,1}]   ;;  %s1809_s1 = inlined_call_operand.vmem [shape: f32[2,136,64], index: 1, kind: input, shape index: {}, may-alias: {0,1}]   ;;  %s1810_s2 = inlined_call_operand.vmem [shape: f32[128,256], index: 2, kind: input, shape index: {}]   ;;  %s1811_s3 = inlined_call_operand.vmem [shape: f32[16,128], index: 3, kind: input, shape index: {}]   ;;  %s1812_s4 = inlined_call_operand.vmem [shape: f32[2,16,128], index: 4, kind: output, shape index: {}]  }
   0x1   :  { %s1464_s17 = smov 0  }
   0x2 LB: > { %s26_s18 = sadd.s32 1, %s1428_s16  ;;  %p1155_p0 = scmp.ge.s32.totalorder %s1432_s17, 1  ;;  %s1432_s17 = sphi %s1464_s17, %s14_s17   ;;  %s1428_s16 = sphi %s1462_s16, %s1814_s16   ;;  %s1424_s15 = sphi %s1460_s15, %s1813_s15  }
   0x3   : > { %p28_p1 = scmp.ge.s32.totalorder %s26_s18, 2  ;;  %p214_p2 = scmp.lt.s32.totalorder %s1432_s17, 3 }
   0x5   : > { %s1816_s18 = smov (%p28_p1, %s26_s18), 0  ;;  %p215_p3 = pnand %p1155_p0, %p214_p2 }
   0x6   : > { %v316_v0 = vld [vmem:[%s1810_s2 + $0x88] sm:$0xff] (!%p215_p3)  ;;  %v318_v1 = vld [vmem:[%s1810_s2 + $0x98] sm:$0xff] (!%p215_p3)  ;;  %p266_p4 = scmp.lt.s32.totalorder (!%p215_p3), %s1424_s15, 1  ;;  %v315_v5 = vld [vmem:[%s1810_s2 + $0x80] sm:$0xff] (!%p215_p3)  ;;  %v1434_v7 = vmov (!%p215_p3), 0.0   ;;  %vm364_vm0 = vcmask (!%p215_p3), 1046528  }
   0x7   : > { %218 = sbr.rel (%p215_p3) target bundleno = 561 (0x231), region = 36  ;;  %v300_v2 = vld [vmem:[%s1810_s2 + $0x8] sm:$0xff] (!%p215_p3)  ;;  %v1250_v3 = vpack.c.bf16 (!%p215_p3), %v318_v1, %v316_v0  ;;  %v302_v4 = vld [vmem:[%s1810_s2 + $0x18] sm:$0xff] (!%p215_p3)  ;;  %v317_v6 = vld [vmem:[%s1810_s2 + $0x90] sm:$0xff] (!%p215_p3)  ;;  %499 = vmatprep.mubr.f32.mxu1 (!%p215_p3), %v1434_v7  ;;  %692 = vmatprep.mubr.f32.mxu0 (!%p215_p3), %v1434_v7  ;;  %vm401_vm1 = vcmask (!%p215_p3), 523264  }
   0x8   : > { %v1266_v8 = vpack.c.bf16 (!%p215_p3), %v302_v4, %v300_v2  ;;  %v1252_v9 = vpack.c.bf16 (!%p215_p3), %v317_v6, %v315_v5  ;;  %v299_v10 = vld [vmem:[%s1810_s2] sm:$0xff] (!%p215_p3)  ;;  %v301_v11 = vld [vmem:[%s1810_s2 + $0x10] sm:$0xff] (!%p215_p3)  ;;  %v320_v12 = vld [vmem:[%s1810_s2 + $0xa8] sm:$0xff] (!%p215_p3) }
   0x9   : > { %1251 = vmatprep.subr.bf16.mxu1 (!%p215_p3), %v1250_v3  ;;  %v1268_v13 = vpack.c.bf16 (!%p215_p3), %v301_v11, %v299_v10  ;;  %v322_v14 = vld [vmem:[%s1810_s2 + $0xb8] sm:$0xff] (!%p215_p3)  ;;  %v304_v15 = vld [vmem:[%s1810_s2 + $0x28] sm:$0xff] (!%p215_p3)  ;;  %v319_v19 = vld [vmem:[%s1810_s2 + $0xa0] sm:$0xff] (!%p215_p3) }
   0xa   : > { %v306_v16 = vld [vmem:[%s1810_s2 + $0x38] sm:$0xff] (!%p215_p3)  ;;  %1267 = vmatprep.subr.bf16.mxu0 (!%p215_p3), %v1266_v8  ;;  %1253 = vmatpush1.bf16.msra.mxu1 (!%p215_p3), %v1252_v9  ;;  %v1254_v17 = vpack.c.bf16 (!%p215_p3), %v322_v14, %v320_v12  ;;  %v321_v20 = vld [vmem:[%s1810_s2 + $0xb0] sm:$0xff] (!%p215_p3)  ;;  %v303_v21 = vld [vmem:[%s1810_s2 + $0x20] sm:$0xff] (!%p215_p3) }
   0xb   : > { %v1270_v18 = vpack.c.bf16 (!%p215_p3), %v306_v16, %v304_v15  ;;  %1269 = vmatpush1.bf16.msra.mxu0 (!%p215_p3), %v1268_v13  ;;  %v1256_v22 = vpack.c.bf16 (!%p215_p3), %v321_v20, %v319_v19  ;;  %v305_v23 = vld [vmem:[%s1810_s2 + $0x30] sm:$0xff] (!%p215_p3)  ;;  %v324_v24 = vld [vmem:[%s1810_s2 + $0xc8] sm:$0xff] (!%p215_p3)  ;;  %v326_v25 = vld [vmem:[%s1810_s2 + $0xd8] sm:$0xff] (!%p215_p3) }
   0xc   : > { %1255 = vmatprep.subr.bf16.mxu1 (!%p215_p3), %v1254_v17  ;;  %v1272_v26 = vpack.c.bf16 (!%p215_p3), %v305_v23, %v303_v21  ;;  %v1258_v27 = vpack.c.bf16 (!%p215_p3), %v326_v25, %v324_v24  ;;  %v308_v28 = vld [vmem:[%s1810_s2 + $0x48] sm:$0xff] (!%p215_p3)  ;;  %v310_v29 = vld [vmem:[%s1810_s2 + $0x58] sm:$0xff] (!%p215_p3)  ;;  %v323_v30 = vld [vmem:[%s1810_s2 + $0xc0] sm:$0xff] (!%p215_p3) }
   0xd   : > { %1271 = vmatprep.subr.bf16.mxu0 (!%p215_p3), %v1270_v18  ;;  %v1274_v31 = vpack.c.bf16 (!%p215_p3), %v310_v29, %v308_v28  ;;  %v325_v32 = vld [vmem:[%s1810_s2 + $0xd0] sm:$0xff] (!%p215_p3)  ;;  %v307_v33 = vld [vmem:[%s1810_s2 + $0x40] sm:$0xff] (!%p215_p3)  ;;  %v328_v36 = vld [vmem:[%s1810_s2 + $0xe8] sm:$0xff] (!%p215_p3) }
   0xe   : > { %s1818_s15 = smov (!%p266_p4, %s1424_s15), 1  ;;  %v309_v34 = vld [vmem:[%s1810_s2 + $0x50] sm:$0xff]  ;;  %1257 = vmatpush1.bf16.msra.mxu1 %v1256_v22  ;;  %v1260_v35 = vpack.c.bf16 %v325_v32, %v323_v30  ;;  %v330_v37 = vld [vmem:[%s1810_s2 + $0xf8] sm:$0xff]  ;;  %v312_v38 = vld [vmem:[%s1810_s2 + $0x68] sm:$0xff] }
   0xf   : > { %s1346_s27 = smul.u32 136, %s1818_s15  ;;  %1273 = vmatpush1.bf16.msra.mxu0 %v1272_v26  ;;  %1259 = vmatprep.subr.bf16.mxu1 %v1258_v27  ;;  %v1276_v39 = vpack.c.bf16 %v309_v34, %v307_v33  ;;  %v1262_v40 = vpack.c.bf16 %v330_v37, %v328_v36  ;;  %v314_v41 = vld [vmem:[%s1810_s2 + $0x78] sm:$0xff]  ;;  %v327_v42 = vld [vmem:[%s1810_s2 + $0xe0] sm:$0xff]  ;;  %v329_v43 = vld [vmem:[%s1810_s2 + $0xf0] sm:$0xff]  ;;  %s1196_s30 = sshll.u32 %s1818_s15, 4 }
  0x10   : > { %1275 = vmatprep.subr.bf16.mxu0 %v1274_v31  ;;  %v1278_v44 = vpack.c.bf16 %v314_v41, %v312_v38  ;;  %v311_v45 = vld [vmem:[%s1810_s2 + $0x60] sm:$0xff]  ;;  %v313_v46 = vld [vmem:[%s1810_s2 + $0x70] sm:$0xff]  ;;  %v1264_v49 = vpack.c.bf16 %v329_v43, %v327_v42  ;;  %s298_s7 = scalar_lea.vmem %s1812_s4, %s1196_s30 }
  0x11   : > { %s1560_s26 = scalar_lea.vmem %s1808_s0, %s1346_s27  ;;  %v1280_v52 = vpack.c.bf16 %v313_v46, %v311_v45  ;;  %s1195_s22 = sadd.s32 128, %s1346_s27  ;;  %v965_v36 = vld [vmem:[%s1811_s3] sm:$0xff] }
  0x12   : > { %v331_v47 = vld [vmem:[%s1560_s26] sm:$0xff]  ;;  %v332_v48 = vld [vmem:[%s1560_s26 + $0x8] sm:$0xff]  ;;  %1261 = vmatpush1.bf16.msra.mxu1 %v1260_v35  ;;  %v333_v53 = vld [vmem:[%s1560_s26 + $0x10] sm:$0xff]  ;;  %s288_s25 = scalar_lea.vmem %s1809_s1, %s1195_s22 }
  0x13   : > { %v365_v50 = vrot.slane %v331_v47, 1  ;;  %v366_v51 = vrot.slane %v332_v48, 1  ;;  %1277 = vmatpush1.bf16.msra.mxu0 %v1276_v39  ;;  %1263 = vmatprep.subr.bf16.mxu1 %v1262_v40  ;;  %v368_v55 = vrot.slane %v333_v53, 1  ;;  %v334_v56 = vld [vmem:[%s1560_s26 + $0x18] sm:$0xff]  ;;  %v335_v59 = vld [vmem:[%s1560_s26 + $0x20] sm:$0xff]  ;;  %v336_v62 = vld [vmem:[%s1560_s26 + $0x28] sm:$0xff] }
  0x14   : > { %1279 = vmatprep.subr.bf16.mxu0 %v1278_v44  ;;  %v370_v58 = vrot.slane %v334_v56, 1  ;;  %v372_v61 = vrot.slane %v335_v59, 1  ;;  %v374_v0 = vrot.slane %v336_v62, 1  ;;  %v337_v1 = vld [vmem:[%s1560_s26 + $0x30] sm:$0xff]  ;;  %v338_v4 = vld [vmem:[%s1560_s26 + $0x38] sm:$0xff]  ;;  %v339_v8 = vld [vmem:[%s1560_s26 + $0x40] sm:$0xff] }
  0x15   : > { %v367_v54 = vsel %vm364_vm0, %v365_v50, %v366_v51  ;;  %v369_v57 = vsel %vm364_vm0, %v366_v51, %v368_v55  ;;  %v376_v3 = vrot.slane %v337_v1, 1  ;;  %v378_v6 = vrot.slane %v338_v4, 1  ;;  %v340_v11 = vld [vmem:[%s1560_s26 + $0x48] sm:$0xff]  ;;  %v341_v14 = vld [vmem:[%s1560_s26 + $0x50] sm:$0xff]  ;;  %v342_v17 = vld [vmem:[%s1560_s26 + $0x58] sm:$0xff] }
  0x16   : > { %1265 = vmatpush1.bf16.msra.mxu1 %v1264_v49  ;;  %v371_v60 = vsel %vm364_vm0, %v368_v55, %v370_v58  ;;  %v373_v63 = vsel %vm364_vm0, %v370_v58, %v372_v61  ;;  %v375_v2 = vsel %vm364_vm0, %v372_v61, %v374_v0  ;;  %v380_v10 = vrot.slane %v339_v8, 1  ;;  %v343_v20 = vld [vmem:[%s1560_s26 + $0x60] sm:$0xff]  ;;  %v344_v23 = vld [vmem:[%s1560_s26 + $0x68] sm:$0xff]  ;;  %v345_v26 = vld [vmem:[%s1560_s26 + $0x70] sm:$0xff] }
  0x17   : > { %1281 = vmatpush1.bf16.msra.mxu0 %v1280_v52  ;;  %v377_v5 = vsel %vm364_vm0, %v374_v0, %v376_v3  ;;  %v379_v9 = vsel %vm364_vm0, %v376_v3, %v378_v6  ;;  %v382_v13 = vrot.slane %v340_v11, 1  ;;  %v384_v16 = vrot.slane %v341_v14, 1  ;;  %v346_v29 = vld [vmem:[%s1560_s26 + $0x78] sm:$0xff]  ;;  %v347_v32 = vld [vmem:[%s288_s25] sm:$0xff] }
  0x18   : > { %v381_v12 = vsel %vm364_vm0, %v378_v6, %v380_v10  ;;  %v386_v19 = vrot.slane %v342_v17, 1  ;;  %v388_v22 = vrot.slane %v343_v20, 1  ;;  %v390_v25 = vrot.slane %v344_v23, 1 }
  0x19   : > { %1160 = vmatmul.mubr.msk.f32.vlgmr.msra.gmra.mrb[0].mxu1 %vm401_vm1, %v367_v54  ;;  %v383_v15 = vsel %vm364_vm0, %v380_v10, %v382_v13  ;;  %v385_v18 = vsel %vm364_vm0, %v382_v13, %v384_v16  ;;  %v392_v28 = vrot.slane %v345_v26, 1  ;;  %v394_v31 = vrot.slane %v346_v29, 1 }
  0x1a   : > { %1176 = vmatmul.mubr.msk.f32.vlgmr.msra.gmra.mrb[0].mxu0 %vm401_vm1, %v331_v47  ;;  %505 = vmatprep.mubr.f32.mxu1 %v1434_v7  ;;  %v387_v21 = vsel %vm364_vm0, %v384_v16, %v386_v19  ;;  %v389_v24 = vsel %vm364_vm0, %v386_v19, %v388_v22  ;;  %v391_v27 = vsel %vm364_vm0, %v388_v22, %v390_v25  ;;  %v398_v34 = vrot.slane %v347_v32, 1 }
  0x1b   : > { %698 = vmatprep.mubr.f32.mxu0 %v1434_v7  ;;  %v393_v30 = vsel %vm364_vm0, %v390_v25, %v392_v28  ;;  %v395_v33 = vsel %vm364_vm0, %v392_v28, %v394_v31 }
  0x1c   : > { %v400_v35 = vsel %vm364_vm0, %v394_v31, %v398_v34 }
  0x1d   : > { %1161 = vmatmul.mubr.msk.f32.gmra.mrb[2].mxu1 %vm401_vm1, %v369_v57 }
  0x1e   : > { %1177 = vmatmul.mubr.msk.f32.gmra.mrb[2].mxu0 %vm401_vm1, %v332_v48  ;;  %511 = vmatprep.mubr.f32.mxu1 %v1434_v7 }
  0x1f   : > { %704 = vmatprep.mubr.f32.mxu0 %v1434_v7 }
  0x21   : > { %1162 = vmatmul.mubr.msk.f32.gmra.mrb[4].mxu1 %vm401_vm1, %v371_v60 }
  0x22   : > { %1178 = vmatmul.mubr.msk.f32.gmra.mrb[4].mxu0 %vm401_vm1, %v333_v53  ;;  %517 = vmatprep.mubr.f32.mxu1 %v1434_v7 }
  0x23   : > { %710 = vmatprep.mubr.f32.mxu0 %v1434_v7 }
  0x25   : > { %1163 = vmatmul.mubr.msk.f32.gmra.mrb[6].mxu1 %vm401_vm1, %v373_v63 }
  0x26   : > { %1179 = vmatmul.mubr.msk.f32.gmra.mrb[6].mxu0 %vm401_vm1, %v334_v56  ;;  %523 = vmatprep.mubr.f32.mxu1 %v1434_v7 }
  0x27   : > { %716 = vmatprep.mubr.f32.mxu0 %v1434_v7 }
  0x29   : > { %1164 = vmatmul.mubr.msk.f32.gmra.mrb[8].mxu1 %vm401_vm1, %v375_v2 }
  0x2a   : > { %1180 = vmatmul.mubr.msk.f32.gmra.mrb[8].mxu0 %vm401_vm1, %v335_v59  ;;  %529 = vmatprep.mubr.f32.mxu1 %v1434_v7 }
  0x2b   : > { %722 = vmatprep.mubr.f32.mxu0 %v1434_v7 }
  0x2d   : > { %1165 = vmatmul.mubr.msk.f32.gmra.mrb[10].mxu1 %vm401_vm1, %v377_v5 }
  0x2e   : > { %1181 = vmatmul.mubr.msk.f32.gmra.mrb[10].mxu0 %vm401_vm1, %v336_v62  ;;  %535 = vmatprep.mubr.f32.mxu1 %v1434_v7 }
  0x2f   : > { %728 = vmatprep.mubr.f32.mxu0 %v1434_v7 }
  0x31   : > { %1166 = vmatmul.mubr.msk.f32.gmra.mrb[12].mxu1 %vm401_vm1, %v379_v9 }
  0x32   : > { %1182 = vmatmul.mubr.msk.f32.gmra.mrb[12].mxu0 %vm401_vm1, %v337_v1  ;;  %541 = vmatprep.mubr.f32.mxu1 %v1434_v7 }
  0x33   : > { %734 = vmatprep.mubr.f32.mxu0 %v1434_v7 }
  0x35   : > { %1167 = vmatmul.mubr.msk.f32.gmra.mrb[14].mxu1 %vm401_vm1, %v381_v12 }
  0x36   : > { %1183 = vmatmul.mubr.msk.f32.gmra.mrb[14].mxu0 %vm401_vm1, %v338_v4  ;;  %547 = vmatprep.mubr.f32.mxu1 %v1434_v7 }
  0x37   : > { %740 = vmatprep.mubr.f32.mxu0 %v1434_v7 }
  0x39   : > { %1168 = vmatmul.mubr.msk.f32.gmra.mrb[16].mxu1 %vm401_vm1, %v383_v15 }
  0x3a   : > { %1184 = vmatmul.mubr.msk.f32.gmra.mrb[16].mxu0 %vm401_vm1, %v339_v8  ;;  %553 = vmatprep.mubr.f32.mxu1 %v1434_v7 }
  0x3b   : > { %746 = vmatprep.mubr.f32.mxu0 %v1434_v7 }
  0x3d   : > { %1169 = vmatmul.mubr.msk.f32.gmra.mrb[18].mxu1 %vm401_vm1, %v385_v18 }
  0x3e   : > { %1185 = vmatmul.mubr.msk.f32.gmra.mrb[18].mxu0 %vm401_vm1, %v340_v11  ;;  %559 = vmatprep.mubr.f32.mxu1 %v1434_v7 }
  0x3f   : > { %752 = vmatprep.mubr.f32.mxu0 %v1434_v7 }
  0x41   : > { %1170 = vmatmul.mubr.msk.f32.gmra.mrb[20].mxu1 %vm401_vm1, %v387_v21 }
  0x42   : > { %1186 = vmatmul.mubr.msk.f32.gmra.mrb[20].mxu0 %vm401_vm1, %v341_v14  ;;  %565 = vmatprep.mubr.f32.mxu1 %v1434_v7 }
  0x43   : > { %758 = vmatprep.mubr.f32.mxu0 %v1434_v7 }
  0x45   : > { %1171 = vmatmul.mubr.msk.f32.gmra.mrb[22].mxu1 %vm401_vm1, %v389_v24 }
  0x46   : > { %1187 = vmatmul.mubr.msk.f32.gmra.mrb[22].mxu0 %vm401_vm1, %v342_v17  ;;  %571 = vmatprep.mubr.f32.mxu1 %v1434_v7 }
  0x47   : > { %764 = vmatprep.mubr.f32.mxu0 %v1434_v7 }
  0x49   : > { %1172 = vmatmul.mubr.msk.f32.gmra.mrb[24].mxu1 %vm401_vm1, %v391_v27 }
  0x4a   : > { %1188 = vmatmul.mubr.msk.f32.gmra.mrb[24].mxu0 %vm401_vm1, %v343_v20  ;;  %577 = vmatprep.mubr.f32.mxu1 %v1434_v7 }
  0x4b   : > { %770 = vmatprep.mubr.f32.mxu0 %v1434_v7 }
  0x4d   : > { %1173 = vmatmul.mubr.msk.f32.gmra.mrb[26].mxu1 %vm401_vm1, %v393_v30 }
  0x4e   : > { %1189 = vmatmul.mubr.msk.f32.gmra.mrb[26].mxu0 %vm401_vm1, %v344_v23  ;;  %583 = vmatprep.mubr.f32.mxu1 %v1434_v7 }
  0x4f   : > { %776 = vmatprep.mubr.f32.mxu0 %v1434_v7 }
  0x51   : > { %1174 = vmatmul.mubr.msk.f32.gmra.mrb[28].mxu1 %vm401_vm1, %v395_v33 }
  0x52   : > { %1190 = vmatmul.mubr.msk.f32.gmra.mrb[28].mxu0 %vm401_vm1, %v345_v26  ;;  %589 = vmatprep.mubr.f32.mxu1 %v1434_v7 }
  0x53   : > { %782 = vmatprep.mubr.f32.mxu0 %v1434_v7 }
  0x55   : > { %1175 = vmatmul.mubr.msk.f32.gmra.mrb[30].mxu1 %vm401_vm1, %v400_v35 }
  0x56   : > { %1191 = vmatmul.mubr.msk.f32.gmra.mrb[30].mxu0 %vm401_vm1, %v346_v29  ;;  %1247 = vmatprep.mubr.f32.mxu1 %v965_v36 }
  0xec   : > { %v501_v37 = vpop.f32.mrb[0].mxu1 }
  0xed   : > { %v694_v38 = vpop.f32.mrb[0].mxu0  ;;  %v503_v39 = vpop.f32.mrb[1].mxu1 }
  0xee   : > { %v695_v40 = vadd.f32 %v694_v38, %v501_v37  ;;  %v696_v41 = vpop.f32.mrb[1].mxu0 }
  0xef   : > { %v697_v42 = vadd.f32 %v696_v41, %v503_v39 }
  0xf0   : > { %v789_v43 = vmul.f32 %v695_v40, %v695_v40  ;;  %v507_v44 = vpop.f32.mrb[2].mxu1 }
  0xf1   : > { %v805_v45 = vmul.f32 %v697_v42, %v697_v42  ;;  %v700_v46 = vpop.f32.mrb[2].mxu0  ;;  %v509_v7 = vpop.f32.mrb[3].mxu1 }
  0xf2   : > { %v701_v47 = vadd.f32 %v700_v46, %v507_v44  ;;  %v702_v48 = vpop.f32.mrb[3].mxu0 }
  0xf3   : > { %v821_v49 = vadd.f32 %v805_v45, %v789_v43  ;;  %v703_v50 = vadd.f32 %v702_v48, %v509_v7 }
  0xf4   : > { %v790_v51 = vmul.f32 %v701_v47, %v701_v47  ;;  %v513_v52 = vpop.f32.mrb[4].mxu1 }
  0xf5   : > { %v1688_v53 = vadd.f32 1e-09, %v821_v49  ;;  %v806_v54 = vmul.f32 %v703_v50, %v703_v50  ;;  %v706_v55 = vpop.f32.mrb[4].mxu0  ;;  %v515_v56 = vpop.f32.mrb[5].mxu1 }
  0xf6   : > { %v707_v57 = vadd.f32 %v706_v55, %v513_v52  ;;  %v708_v58 = vpop.f32.mrb[5].mxu0 }
  0xf7   : > { %1374 = vrsqrt.f32 %v1688_v53  ;;  %v822_v59 = vadd.f32 %v806_v54, %v790_v51  ;;  %v709_v60 = vadd.f32 %v708_v58, %v515_v56  ;;  %vm855_vm2 = vcmp.eq.f32.partialorder %v1688_v53, inf }
  0xf8   : > { %v791_v61 = vmul.f32 %v707_v57, %v707_v57  ;;  %v519_v62 = vpop.f32.mrb[6].mxu1  ;;  %v858_v37 = vand.u32 2147483648, %v1688_v53  ;;  %vm857_vm4 = vcmp.eq.f32.partialorder %v1688_v53, 0.0 }
  0xf9   : > { %v1691_v63 = vadd.f32 1e-09, %v822_v59  ;;  %v807_v0 = vmul.f32 %v709_v60, %v709_v60  ;;  %v712_v1 = vpop.f32.mrb[6].mxu0  ;;  %v521_v2 = vpop.f32.mrb[7].mxu1 }
  0xfa   : > { %v713_v3 = vadd.f32 %v712_v1, %v519_v62  ;;  %v714_v4 = vpop.f32.mrb[7].mxu0 }
  0xfb   : > { %1376 = vrsqrt.f32 %v1691_v63  ;;  %v823_v5 = vadd.f32 %v807_v0, %v791_v61  ;;  %v715_v6 = vadd.f32 %v714_v4, %v521_v2  ;;  %vm862_vm3 = vcmp.eq.f32.partialorder %v1691_v63, inf }
  0xfc   : > { %v792_v8 = vmul.f32 %v713_v3, %v713_v3  ;;  %v525_v9 = vpop.f32.mrb[8].mxu1  ;;  %v865_v44 = vand.u32 2147483648, %v1691_v63  ;;  %vm864_vm5 = vcmp.eq.f32.partialorder %v1691_v63, 0.0 }
  0xfd   : > { %v1694_v10 = vadd.f32 1e-09, %v823_v5  ;;  %v808_v11 = vmul.f32 %v715_v6, %v715_v6  ;;  %v718_v12 = vpop.f32.mrb[8].mxu0  ;;  %v527_v13 = vpop.f32.mrb[9].mxu1 }
  0xfe   : > { %v719_v14 = vadd.f32 %v718_v12, %v525_v9  ;;  %v720_v15 = vpop.f32.mrb[9].mxu0 }
  0xff   : > { %1378 = vrsqrt.f32 %v1694_v10  ;;  %v824_v16 = vadd.f32 %v808_v11, %v792_v8  ;;  %v721_v17 = vadd.f32 %v720_v15, %v527_v13  ;;  %vm869_vm6 = vcmp.eq.f32.partialorder %v1694_v10, inf }
 0x100   : > { %v793_v18 = vmul.f32 %v719_v14, %v719_v14  ;;  %v531_v19 = vpop.f32.mrb[10].mxu1  ;;  %v872_v3 = vand.u32 2147483648, %v1694_v10  ;;  %vm871_vm8 = vcmp.eq.f32.partialorder %v1694_v10, 0.0 }
 0x101   : > { %v1375_v20 = vpop.eup %1374  ;;  %v1697_v21 = vadd.f32 1e-09, %v824_v16  ;;  %v809_v22 = vmul.f32 %v721_v17, %v721_v17  ;;  %v724_v23 = vpop.f32.mrb[10].mxu0 }
 0x102   : > { %v533_v24 = vpop.f32.mrb[11].mxu1  ;;  %v725_v25 = vadd.f32 %v724_v23, %v531_v19  ;;  %v726_v26 = vpop.f32.mrb[11].mxu0  ;;  %v854_v27 = vmul.f32 %v1375_v20, %v1688_v53 }
 0x103   : > { %1380 = vrsqrt.f32 %v1697_v21  ;;  %v825_v28 = vadd.f32 %v809_v22, %v793_v18  ;;  %v727_v29 = vadd.f32 %v726_v26, %v533_v24  ;;  %vm876_vm7 = vcmp.eq.f32.partialorder %v1697_v21, inf }
 0x104   : > { %v794_v30 = vmul.f32 %v725_v25, %v725_v25  ;;  %v537_v31 = vpop.f32.mrb[12].mxu1  ;;  %v856_v40 = vsel %vm855_vm2, %v1688_v53, %v854_v27  ;;  %v879_v12 = vand.u32 2147483648, %v1697_v21  ;;  %vm878_vm9 = vcmp.eq.f32.partialorder %v1697_v21, 0.0 }
 0x105   : > { %v1377_v32 = vpop.eup %1376  ;;  %v1701_v33 = vadd.f32 1e-09, %v825_v28  ;;  %v810_v34 = vmul.f32 %v727_v29, %v727_v29  ;;  %v730_v35 = vpop.f32.mrb[12].mxu0  ;;  %v859_v52 = vsel %vm857_vm4, %v858_v37, %v856_v40 }
 0x106   : > { %v539_v36 = vpop.f32.mrb[13].mxu1  ;;  %v731_v38 = vadd.f32 %v730_v35, %v537_v31  ;;  %v732_v39 = vpop.f32.mrb[13].mxu0  ;;  %v861_v41 = vmul.f32 %v1377_v32, %v1691_v63 }
 0x107   : > { %1382 = vrsqrt.f32 %v1701_v33  ;;  %v826_v42 = vadd.f32 %v810_v34, %v794_v30  ;;  %v733_v43 = vadd.f32 %v732_v39, %v539_v36  ;;  %vm883_vm10 = vcmp.eq.f32.partialorder %v1701_v33, inf }
 0x108   : > { %v795_v45 = vmul.f32 %v731_v38, %v731_v38  ;;  %v543_v46 = vpop.f32.mrb[14].mxu1  ;;  %v863_v7 = vsel %vm862_vm3, %v1691_v63, %v861_v41  ;;  %v886_v36 = vand.u32 2147483648, %v1701_v33  ;;  %vm885_vm12 = vcmp.eq.f32.partialorder %v1701_v33, 0.0 }
 0x109   : > { %v1379_v47 = vpop.eup %1378  ;;  %v1713_v48 = vadd.f32 1e-09, %v826_v42  ;;  %v811_v49 = vmul.f32 %v733_v43, %v733_v43  ;;  %v736_v50 = vpop.f32.mrb[14].mxu0  ;;  %v866_v54 = vsel %vm864_vm5, %v865_v44, %v863_v7 }
 0x10a   : > { %v545_v51 = vpop.f32.mrb[15].mxu1  ;;  %v737_v55 = vadd.f32 %v736_v50, %v543_v46  ;;  %v738_v56 = vpop.f32.mrb[15].mxu0  ;;  %v1282_v57 = vpack.c.bf16 %v866_v54, %v859_v52  ;;  %v868_v58 = vmul.f32 %v1379_v47, %v1694_v10 }
 0x10b   : > { %1384 = vrsqrt.f32 %v1713_v48  ;;  %v827_v53 = vadd.f32 %v811_v49, %v795_v45  ;;  %v739_v59 = vadd.f32 %v738_v56, %v545_v51  ;;  %vm890_vm11 = vcmp.eq.f32.partialorder %v1713_v48, inf }
 0x10c   : > { %v796_v60 = vmul.f32 %v737_v55, %v737_v55  ;;  %1283 = vmatprep.subr.bf16.mxu1 %v1282_v57  ;;  %v549_v61 = vpop.f32.mrb[16].mxu1  ;;  %v870_v6 = vsel %vm869_vm6, %v1694_v10, %v868_v58  ;;  %v893_v43 = vand.u32 2147483648, %v1713_v48  ;;  %vm892_vm13 = vcmp.eq.f32.partialorder %v1713_v48, 0.0 }
 0x10d   : > { %v1381_v62 = vpop.eup %1380  ;;  %v1717_v63 = vadd.f32 1e-09, %v827_v53  ;;  %v812_v0 = vmul.f32 %v739_v59, %v739_v59  ;;  %v742_v1 = vpop.f32.mrb[16].mxu0  ;;  %1285 = vmatpush3.bf16.xpose.msra.mxu1 %v1282_v57  ;;  %v873_v22 = vsel %vm871_vm8, %v872_v3, %v870_v6 }
 0x10e   : > { %v551_v2 = vpop.f32.mrb[17].mxu1  ;;  %v743_v4 = vadd.f32 %v742_v1, %v549_v61  ;;  %v744_v5 = vpop.f32.mrb[17].mxu0  ;;  %v875_v8 = vmul.f32 %v1381_v62, %v1697_v21 }
 0x10f   : > { %1386 = vrsqrt.f32 %v1717_v63  ;;  %v828_v9 = vadd.f32 %v812_v0, %v796_v60  ;;  %v745_v11 = vadd.f32 %v744_v5, %v551_v2  ;;  %vm897_vm14 = vcmp.eq.f32.partialorder %v1717_v63, inf }
 0x110   : > { %v797_v13 = vmul.f32 %v743_v4, %v743_v4  ;;  %v555_v14 = vpop.f32.mrb[18].mxu1  ;;  %v877_v15 = vsel %vm876_vm7, %v1697_v21, %v875_v8  ;;  %v900_v2 = vand.u32 2147483648, %v1717_v63  ;;  %vm899_vm0 = vcmp.eq.f32.partialorder %v1717_v63, 0.0 }
 0x111   : > { %v1383_v16 = vpop.eup %1382  ;;  %v1729_v17 = vadd.f32 1e-09, %v828_v9  ;;  %v813_v18 = vmul.f32 %v745_v11, %v745_v11  ;;  %v748_v19 = vpop.f32.mrb[18].mxu0  ;;  %v880_v23 = vsel %vm878_vm9, %v879_v12, %v877_v15 }
 0x112   : > { %v557_v20 = vpop.f32.mrb[19].mxu1  ;;  %v749_v24 = vadd.f32 %v748_v19, %v555_v14  ;;  %v750_v25 = vpop.f32.mrb[19].mxu0  ;;  %v1286_v26 = vpack.c.bf16 %v880_v23, %v873_v22  ;;  %v882_v27 = vmul.f32 %v1383_v16, %v1701_v33 }
 0x113   : > { %1388 = vrsqrt.f32 %v1729_v17  ;;  %v829_v10 = vadd.f32 %v813_v18, %v797_v13  ;;  %v751_v28 = vadd.f32 %v750_v25, %v557_v20  ;;  %vm904_vm15 = vcmp.eq.f32.partialorder %v1729_v17, inf }
 0x114   : > { %v798_v29 = vmul.f32 %v749_v24, %v749_v24  ;;  %1287 = vmatprep.subr.bf16.mxu1 %v1286_v26  ;;  %v561_v21 = vpop.f32.mrb[20].mxu1  ;;  %v884_v39 = vsel %vm883_vm10, %v1701_v33, %v882_v27  ;;  %v907_v11 = vand.u32 2147483648, %v1729_v17  ;;  %vm906_vm1 = vcmp.eq.f32.partialorder %v1729_v17, 0.0 }
 0x115   : > { %v1385_v30 = vpop.eup %1384  ;;  %v1733_v31 = vadd.f32 1e-09, %v829_v10  ;;  %v814_v32 = vmul.f32 %v751_v28, %v751_v28  ;;  %v754_v34 = vpop.f32.mrb[20].mxu0  ;;  %1289 = vmatpush3.bf16.xpose.msra.mxu1 %v1286_v26  ;;  %v887_v52 = vsel %vm885_vm12, %v886_v36, %v884_v39 }
 0x116   : > { %v563_v35 = vpop.f32.mrb[21].mxu1  ;;  %v755_v37 = vadd.f32 %v754_v34, %v561_v21  ;;  %v756_v38 = vpop.f32.mrb[21].mxu0  ;;  %v889_v40 = vmul.f32 %v1385_v30, %v1713_v48 }
 0x117   : > { %1390 = vrsqrt.f32 %v1733_v31  ;;  %v830_v41 = vadd.f32 %v814_v32, %v798_v29  ;;  %v757_v42 = vadd.f32 %v756_v38, %v563_v35  ;;  %vm911_vm2 = vcmp.eq.f32.partialorder %v1733_v31, inf }
 0x118   : > { %v799_v44 = vmul.f32 %v755_v37, %v755_v37  ;;  %v567_v45 = vpop.f32.mrb[22].mxu1  ;;  %v891_v46 = vsel %vm890_vm11, %v1713_v48, %v889_v40  ;;  %v914_v35 = vand.u32 2147483648, %v1733_v31  ;;  %vm913_vm4 = vcmp.eq.f32.partialorder %v1733_v31, 0.0 }
 0x119   : > { %v1387_v7 = vpop.eup %1386  ;;  %v1745_v47 = vadd.f32 1e-09, %v830_v41  ;;  %v815_v49 = vmul.f32 %v757_v42, %v757_v42  ;;  %v760_v50 = vpop.f32.mrb[22].mxu0  ;;  %v894_v54 = vsel %vm892_vm13, %v893_v43, %v891_v46 }
 0x11a   : > { %v569_v51 = vpop.f32.mrb[23].mxu1  ;;  %v761_v55 = vadd.f32 %v760_v50, %v567_v45  ;;  %v762_v56 = vpop.f32.mrb[23].mxu0  ;;  %v1290_v57 = vpack.c.bf16 %v894_v54, %v887_v52  ;;  %v896_v58 = vmul.f32 %v1387_v7, %v1717_v63 }
 0x11b   : > { %1392 = vrsqrt.f32 %v1745_v47  ;;  %v831_v33 = vadd.f32 %v815_v49, %v799_v44  ;;  %v763_v53 = vadd.f32 %v762_v56, %v569_v51  ;;  %vm918_vm3 = vcmp.eq.f32.partialorder %v1745_v47, inf }
 0x11c   : > { %v800_v59 = vmul.f32 %v761_v55, %v761_v55  ;;  %1291 = vmatprep.subr.bf16.mxu1 %v1290_v57  ;;  %v573_v48 = vpop.f32.mrb[24].mxu1  ;;  %v898_v5 = vsel %vm897_vm14, %v1717_v63, %v896_v58  ;;  %v921_v42 = vand.u32 2147483648, %v1745_v47  ;;  %vm920_vm5 = vcmp.eq.f32.partialorder %v1745_v47, 0.0 }
 0x11d   : > { %v1389_v60 = vpop.eup %1388  ;;  %v1749_v61 = vadd.f32 1e-09, %v831_v33  ;;  %v816_v62 = vmul.f32 %v763_v53, %v763_v53  ;;  %v766_v0 = vpop.f32.mrb[24].mxu0  ;;  %1293 = vmatpush3.bf16.xpose.msra.mxu1 %v1290_v57  ;;  %v901_v22 = vsel %vm899_vm0, %v900_v2, %v898_v5 }
 0x11e   : > { %v575_v1 = vpop.f32.mrb[25].mxu1  ;;  %v767_v3 = vadd.f32 %v766_v0, %v573_v48  ;;  %v768_v4 = vpop.f32.mrb[25].mxu0  ;;  %v903_v6 = vmul.f32 %v1389_v60, %v1729_v17 }
 0x11f   : > { %1394 = vrsqrt.f32 %v1749_v61  ;;  %v832_v8 = vadd.f32 %v816_v62, %v800_v59  ;;  %v769_v9 = vadd.f32 %v768_v4, %v575_v1  ;;  %vm925_vm6 = vcmp.eq.f32.partialorder %v1749_v61, inf }
 0x120   : > { %v801_v12 = vmul.f32 %v767_v3, %v767_v3  ;;  %v579_v13 = vpop.f32.mrb[26].mxu1  ;;  %v905_v14 = vsel %vm904_vm15, %v1729_v17, %v903_v6  ;;  %v928_v62 = vand.u32 2147483648, %v1749_v61  ;;  %vm927_vm8 = vcmp.eq.f32.partialorder %v1749_v61, 0.0 }
 0x121   : > { %v1391_v15 = vpop.eup %1390  ;;  %v1761_v16 = vadd.f32 1e-09, %v832_v8  ;;  %v817_v18 = vmul.f32 %v769_v9, %v769_v9  ;;  %v772_v19 = vpop.f32.mrb[26].mxu0  ;;  %v908_v23 = vsel %vm906_vm1, %v907_v11, %v905_v14 }
 0x122   : > { %v581_v20 = vpop.f32.mrb[27].mxu1  ;;  %v773_v24 = vadd.f32 %v772_v19, %v579_v13  ;;  %v774_v25 = vpop.f32.mrb[27].mxu0  ;;  %v1294_v26 = vpack.c.bf16 %v908_v23, %v901_v22  ;;  %v910_v27 = vmul.f32 %v1391_v15, %v1733_v31 }
 0x123   : > { %1396 = vrsqrt.f32 %v1761_v16  ;;  %v833_v63 = vadd.f32 %v817_v18, %v801_v12  ;;  %v775_v10 = vadd.f32 %v774_v25, %v581_v20  ;;  %vm932_vm7 = vcmp.eq.f32.partialorder %v1761_v16, inf }
 0x124   : > { %v802_v28 = vmul.f32 %v773_v24, %v773_v24  ;;  %1295 = vmatprep.subr.bf16.mxu1 %v1294_v26  ;;  %v585_v17 = vpop.f32.mrb[28].mxu1  ;;  %v912_v38 = vsel %vm911_vm2, %v1733_v31, %v910_v27  ;;  %v935_v2 = vand.u32 2147483648, %v1761_v16  ;;  %vm934_vm9 = vcmp.eq.f32.partialorder %v1761_v16, 0.0 }
 0x125   : > { %v1393_v29 = vpop.eup %1392  ;;  %v1765_v21 = vadd.f32 1e-09, %v833_v63  ;;  %v818_v30 = vmul.f32 %v775_v10, %v775_v10  ;;  %v778_v32 = vpop.f32.mrb[28].mxu0  ;;  %1297 = vmatpush3.bf16.xpose.msra.mxu1 %v1294_v26  ;;  %v915_v52 = vsel %vm913_vm4, %v914_v35, %v912_v38 }
 0x126   : > { %v587_v34 = vpop.f32.mrb[29].mxu1  ;;  %v779_v36 = vadd.f32 %v778_v32, %v585_v17  ;;  %v780_v37 = vpop.f32.mrb[29].mxu0  ;;  %v917_v39 = vmul.f32 %v1393_v29, %v1745_v47 }
 0x127   : > { %1398 = vrsqrt.f32 %v1765_v21  ;;  %v834_v40 = vadd.f32 %v818_v30, %v802_v28  ;;  %v781_v41 = vadd.f32 %v780_v37, %v587_v34  ;;  %vm939_vm10 = vcmp.eq.f32.partialorder %v1765_v21, inf }
 0x128   : > { %v803_v43 = vmul.f32 %v779_v36, %v779_v36  ;;  %v591_v44 = vpop.f32.mrb[30].mxu1  ;;  %v919_v45 = vsel %vm918_vm3, %v1745_v47, %v917_v39  ;;  %v942_v14 = vand.u32 2147483648, %v1765_v21  ;;  %vm941_vm12 = vcmp.eq.f32.partialorder %v1765_v21, 0.0 }
 0x129   : > { %v1395_v46 = vpop.eup %1394  ;;  %v850_v7 = vadd.f32 1e-09, %v834_v40  ;;  %v819_v49 = vmul.f32 %v781_v41, %v781_v41  ;;  %v784_v50 = vpop.f32.mrb[30].mxu0  ;;  %v922_v54 = vsel %vm920_vm5, %v921_v42, %v919_v45 }
 0x12a   : > { %v593_v51 = vpop.f32.mrb[31].mxu1  ;;  %v785_v55 = vadd.f32 %v784_v50, %v591_v44  ;;  %v786_v56 = vpop.f32.mrb[31].mxu0  ;;  %v1298_v57 = vpack.c.bf16 %v922_v54, %v915_v52  ;;  %v924_v58 = vmul.f32 %v1395_v46, %v1749_v61 }
 0x12b   : > { %1400 = vrsqrt.f32 %v850_v7  ;;  %v835_v33 = vadd.f32 %v819_v49, %v803_v43  ;;  %v787_v53 = vadd.f32 %v786_v56, %v593_v51  ;;  %vm946_vm11 = vcmp.eq.f32.partialorder %v850_v7, inf }
 0x12c   : > { %v804_v31 = vmul.f32 %v785_v55, %v785_v55  ;;  %1299 = vmatprep.subr.bf16.mxu1 %v1298_v57  ;;  %v926_v60 = vsel %vm925_vm6, %v1749_v61, %v924_v58  ;;  %v949_v15 = vand.u32 2147483648, %v850_v7  ;;  %vm948_vm13 = vcmp.eq.f32.partialorder %v850_v7, 0.0 }
 0x12d   : > { %v1397_v59 = vpop.eup %1396  ;;  %v851_v48 = vadd.f32 1e-09, %v835_v33  ;;  %v820_v47 = vmul.f32 %v787_v53, %v787_v53  ;;  %1301 = vmatpush3.bf16.xpose.msra.mxu1 %v1298_v57  ;;  %v929_v6 = vsel %vm927_vm8, %v928_v62, %v926_v60 }
 0x12e   : > { %v931_v0 = vmul.f32 %v1397_v59, %v1761_v16 }
 0x12f   : > { %1402 = vrsqrt.f32 %v851_v48  ;;  %v836_v1 = vadd.f32 %v820_v47, %v804_v31  ;;  %vm953_vm14 = vcmp.eq.f32.partialorder %v851_v48, inf  ;;  %v956_v27 = vand.u32 2147483648, %v851_v48 }
 0x130   : > { %v933_v3 = vsel %vm932_vm7, %v1761_v16, %v931_v0  ;;  %vm955_vm0 = vcmp.eq.f32.partialorder %v851_v48, 0.0 }
 0x131   : > { %v1399_v4 = vpop.eup %1398  ;;  %v852_v5 = vadd.f32 1e-09, %v836_v1  ;;  %v936_v8 = vsel %vm934_vm9, %v935_v2, %v933_v3 }
 0x132   : > { %v1302_v9 = vpack.c.bf16 %v936_v8, %v929_v6  ;;  %v938_v11 = vmul.f32 %v1399_v4, %v1765_v21 }
 0x133   : > { %1404 = vrsqrt.f32 %v852_v5  ;;  %vm960_vm15 = vcmp.eq.f32.partialorder %v852_v5, inf  ;;  %v963_v63 = vand.u32 2147483648, %v852_v5  ;;  %vm962_vm1 = vcmp.eq.f32.partialorder %v852_v5, 0.0 }
 0x134   : > { %1303 = vmatprep.subr.bf16.mxu1 %v1302_v9  ;;  %v940_v13 = vsel %vm939_vm10, %v1765_v21, %v938_v11  ;;  %v966_v21 = vld [vmem:[%s1811_s3 + $0x8] sm:$0xff] }
 0x135   : > { %v1401_v12 = vpop.eup %1400  ;;  %1305 = vmatpush3.bf16.xpose.msra.mxu1 %v1302_v9  ;;  %v943_v19 = vsel %vm941_vm12, %v942_v14, %v940_v13 }
 0x136   : > { %v945_v61 = vmul.f32 %v1401_v12, %v850_v7 }
 0x138   : > { %v947_v16 = vsel %vm946_vm11, %v850_v7, %v945_v61 }
 0x139   : > { %v1403_v18 = vpop.eup %1402  ;;  %v950_v20 = vsel %vm948_vm13, %v949_v15, %v947_v16 }
 0x13a   : > { %v1306_v22 = vpack.c.bf16 %v950_v20, %v943_v19  ;;  %v952_v23 = vmul.f32 %v1403_v18, %v851_v48 }
 0x13c   : > { %1307 = vmatprep.subr.bf16.mxu1 %v1306_v22  ;;  %v954_v25 = vsel %vm953_vm14, %v851_v48, %v952_v23 }
 0x13d   : > { %v1405_v24 = vpop.eup %1404  ;;  %1309 = vmatpush3.bf16.xpose.msra.mxu1 %v1306_v22  ;;  %v957_v28 = vsel %vm955_vm0, %v956_v27, %v954_v25 }
 0x13e   : > { %v959_v26 = vmul.f32 %v1405_v24, %v852_v5 }
 0x140   : > { %v961_v10 = vsel %vm960_vm15, %v852_v5, %v959_v26 }
 0x141   : > { %v964_v17 = vsel %vm962_vm1, %v963_v63, %v961_v10 }
 0x142   : > { %v1310_v29 = vpack.c.bf16 %v964_v17, %v957_v28 }
 0x144   : > { %1311 = vmatprep.subr.bf16.mxu1 %v1310_v29 }
 0x145   : > { %1313 = vmatpush3.bf16.xpose.msra.mxu1 %v1310_v29 }
 0x14c   : > { %1248 = vmatmul.mubr.f32.vlgmr.msra.gmra.mrb[32].mxu1 %v966_v21 }
 0x21f   : > { %v1249_v30 = vpop.f32.mrb[32].mxu1 }
 0x220   : > { %v1043_v32 = vmax.f32 %v1249_v30, 1e-05  ;;  %v1033_v34 = vpop.f32.mrb[33].mxu1 }
 0x221   : > { %v1042_v35 = vmax.f32 %v1033_v34, 1e-05 }
 0x222   : > { %1406 = vlog2.f32 %v1043_v32 }
 0x223   : > { %1408 = vlog2.f32 %v1042_v35 }
 0x22c   : > { %v1407_v36 = vpop.eup %1406 }
 0x22d   : > { %v1409_v37 = vpop.eup %1408  ;;  %v1047_v38 = vmul.f32 0.6931472, %v1407_v36 }
 0x22e   : > { %v1045_v39 = vmul.f32 0.6931472, %v1409_v37 }
 0x22f   : > { %1049 = vst [vmem:[%s298_s7 + $0x8] sm:$0xff] %v1047_v38 }
 0x230   : > { %1048 = vst [vmem:[%s298_s7] sm:$0xff] %v1045_v39 }
 0x231 PF: > { %s14_s17 = sadd.s32 1, %s1432_s17   ;;  %s1813_s15 = smov %s1428_s16 }
 0x232   : > { %p11_p5 = scmp.ge.s32.totalorder %s14_s17, 4   ;;  %s1814_s16 = smov %s1816_s18 }
 0x234   :  { %13 = sbr.rel (!%p11_p5) target bundleno = 2 (0x2), region = 69 }

</bundles_post_ra>
